<compile_context>
chip_gen: v6e
topology: v6e:2x2x1
jax: 0.10.0
libtpu: 0.0.40
codegen_flags: <defaults>
</compile_context>

<pallas_src>
import functools

import jax
import jax.numpy as jnp
from jax.experimental import pallas as pl
from jax.experimental.pallas import tpu as pltpu


# ---------------------------------------------------------------------------
# Kernel: whole (Linear -> Sigmoid)* -> Linear stack in one body.
# ---------------------------------------------------------------------------
def _fused_mlp_kernel(x_ref, *refs, num_layers: int):
    o_ref = refs[-1]
    wb_refs = refs[:-1]                      # w0, b0, w1, b1, ..., wL, bL

    h = x_ref[...]
    compute_dtype = h.dtype                  # matmuls stay in this dtype
    for li in range(num_layers):
        w = wb_refs[2 * li][...]
        b = wb_refs[2 * li + 1][...]         # (1, out) broadcasts over rows
        acc = jnp.dot(h, w, preferred_element_type=jnp.float32)
        acc = acc + b.astype(jnp.float32)
        if li < num_layers - 1:
            acc = jax.nn.sigmoid(acc)        # exp -> EUP slot; robust at extremes
        h = acc.astype(compute_dtype)
    o_ref[...] = h.astype(o_ref.dtype)


# ---------------------------------------------------------------------------
# Tiling / VMEM planning helpers.
# ---------------------------------------------------------------------------
def _vmem_capacity_bytes() -> int:
    try:
        return int(pltpu.get_tpu_info().vmem_capacity_bytes)
    except Exception:
        return 64 * 1024 * 1024   # conservative: v7x has 64 MiB per TensorCore


def _weight_bytes(dims, itemsize):
    return sum((din * dout + dout) * itemsize
               for din, dout in zip(dims[:-1], dims[1:]))


def _plan(batch, dims, itemsize):
    """Pick (row_tile, vmem_limit_bytes) from this device's VMEM capacity."""
    vmem_cap = _vmem_capacity_bytes()
    w_bytes = _weight_bytes(dims, itemsize)
    widest = max(dims)
    # Per-row VMEM: double-buffered input+output rows plus live activations
    # (one f32 accumulator row + one compute-dtype row at the widest layer,
    #  doubled for headroom).
    per_row = (2 * dims[0] + 2 * dims[-1]) * itemsize + 2 * widest * (4 + itemsize)
    budget = int(0.75 * vmem_cap) - 2 * w_bytes        # 2x weights: worst-case buffering
    # Generation-aware cap: 128 MiB parts (v5e/v6e) take 1024-row tiles,
    # 64 MiB parts (v7x) stay at 256.
    row_cap = 1024 if vmem_cap >= (96 << 20) else 256
    rows = max(8, min(row_cap, budget // max(per_row, 1), batch))
    tile = max(8, (rows // 8) * 8)

    footprint = (2 * tile * (dims[0] + dims[-1]) * itemsize
                 + 2 * w_bytes
                 + 2 * tile * widest * (4 + itemsize))
    vmem_limit = int(min(vmem_cap, max(footprint + (8 << 20), 32 << 20)))
    return tile, vmem_limit, vmem_cap, w_bytes


_SINGLE_CALL_MAX_ROWS = 128   # above this, split rows across a parallel grid
                              # so both v7x TensorCores get work.


# ---------------------------------------------------------------------------
# Wrapper.
# ---------------------------------------------------------------------------
def mlp_forward(params, x):
    """Pallas-backed forward of the MLP.

    params: list of (w, b) with w: (in, out), b: (out,). params[:-1] are the
    hidden (Linear+Sigmoid) layers, params[-1] is the final Linear.
    """
    batch, in_dim = x.shape
    num_layers = len(params)
    dims = [in_dim] + [w.shape[1] for w, _ in params]
    out_dim = dims[-1]
    itemsize = max(x.dtype.itemsize, params[0][0].dtype.itemsize)

    # Flatten params; keep biases 2-D (1, out) so they broadcast cleanly.
    flat = []
    for w, b in params:
        flat.append(w)
        flat.append(b.reshape(1, -1))

    kernel = functools.partial(_fused_mlp_kernel, num_layers=num_layers)
    out_shape = jax.ShapeDtypeStruct((batch, out_dim), x.dtype)

    tile, vmem_limit, vmem_cap, w_bytes = _plan(batch, dims, itemsize)

    # TODO(synk): add a K/N-tiled accumulator fallback for weight stacks that
    # do not fit in VMEM (the all-weights-resident fused design cannot handle
    # realistically wide layers, e.g. 4096x4096 f32 = 64 MiB).
    if 2 * w_bytes > int(0.7 * vmem_cap):
        raise NotImplementedError("MLP weights do not fit in VMEM")

    flops = 2 * batch * sum(d0 * d1 for d0, d1 in zip(dims[:-1], dims[1:]))
    transcendentals = batch * sum(dims[1:-1])          # one exp per hidden unit
    bytes_accessed = (x.size + batch * out_dim) * x.dtype.itemsize + w_bytes
    cost = pl.CostEstimate(flops=flops, transcendentals=transcendentals,
                           bytes_accessed=bytes_accessed)

    if batch <= max(_SINGLE_CALL_MAX_ROWS, 8):
        # Small batch: single straight-line kernel, everything resident in
        # VMEM for the duration of the call (no grid-loop overhead).
        vmem = pl.BlockSpec(memory_space=pltpu.MemorySpace.VMEM)
        return pl.pallas_call(
            kernel,
            out_shape=out_shape,
            in_specs=[vmem] * (1 + len(flat)),
            out_specs=vmem,
            compiler_params=pltpu.CompilerParams(vmem_limit_bytes=vmem_limit),
            cost_estimate=cost,
        )(x, *flat)

    # Grid path: balanced row tiles. Force an even tile count so the work
    # splits cleanly across v7x's 2 TensorCores, and size each tile as
    # round_up(cdiv(batch, n_tiles), 8) instead of full-tile + ragged tail.
    n_tiles = max(2, pl.cdiv(batch, tile))
    if n_tiles % 2:
        n_tiles += 1
    row_tile = ((batch + n_tiles - 1) // n_tiles + 7) // 8 * 8
    grid = (pl.cdiv(batch, row_tile),)

    def build_and_call(single_buffer_weights: bool):
        in_specs = [pl.BlockSpec((row_tile, in_dim), lambda i: (i, 0))]
        for a in flat:
            if single_buffer_weights:
                # Constant index_map across the grid -> no re-DMA; Buffered(1)
                # also drops the second (wasted) VMEM buffer per weight.
                in_specs.append(pl.BlockSpec(a.shape, lambda i: (0, 0),
                                             pipeline_mode=pl.Buffered(1)))
            else:
                in_specs.append(pl.BlockSpec(a.shape, lambda i: (0, 0)))
        return pl.pallas_call(
            kernel,
            out_shape=out_shape,
            grid=grid,
            in_specs=in_specs,
            out_specs=pl.BlockSpec((row_tile, out_dim), lambda i: (i, 0)),
            compiler_params=pltpu.CompilerParams(
                dimension_semantics=("parallel",),
                vmem_limit_bytes=vmem_limit,
            ),
            cost_estimate=cost,
        )(x, *flat)

    try:
        return build_and_call(single_buffer_weights=True)
    except Exception:
        # Fallback: plain blocked weight specs (double-buffered but proven).
        return build_and_call(single_buffer_weights=False)


# ---------------------------------------------------------------------------
# Deterministic synthetic params matching nn.Linear init (transposed W).
# ---------------------------------------------------------------------------
def init_mlp_params(key, input_dim, h_sizes, output_dim, dtype=jnp.float32):
    params = []
    dims = [input_dim] + list(h_sizes) + [output_dim]
    for idx in range(len(dims) - 1):
        key, kw, kb = jax.random.split(key, 3)
        fan_in, fan_out = dims[idx], dims[idx + 1]
        bound = 1.0 / jnp.sqrt(fan_in)
        w = jax.random.uniform(kw, (fan_in, fan_out), dtype, -bound, bound)
        b = jax.random.uniform(kb, (fan_out,), dtype, -bound, bound)
        params.append((w, b))
    return params


if __name__ == "__main__":
    key = jax.random.PRNGKey(0)
    key, kx = jax.random.split(key)

    input_dim, h_sizes, output_dim = 32, [64, 32], 16
    params = init_mlp_params(key, input_dim, h_sizes, output_dim)

    def reference(p, xin):
        h = xin
        for w, b in p[:-1]:
            h = jax.nn.sigmoid(h @ w + b)
        return h @ p[-1][0] + p[-1][1]

    # Small batch -> single straight-line call path.
    x_small = jax.random.normal(kx, (8, input_dim), dtype=jnp.float32)
    out_small = jax.block_until_ready(mlp_forward(params, x_small))
    assert out_small.shape == (8, output_dim)
    assert jnp.allclose(out_small, reference(params, x_small), atol=1e-5, rtol=1e-5)

    # Larger batch -> balanced row-tile grid path (parallel over TensorCores).
    key, kb = jax.random.split(key)
    x_big = jax.random.normal(kb, (384, input_dim), dtype=jnp.float32)
    out_big = jax.block_until_ready(mlp_forward(params, x_big))
    assert out_big.shape == (384, output_dim)
    assert jnp.allclose(out_big, reference(params, x_big), atol=1e-5, rtol=1e-5)

    print("KERNEL_OK")
</pallas_src>

<mosaic_0001>
module attributes {stable_mosaic.version = 11 : i64} {
  func.func @_fused_mlp_kernel(%arg0: memref<8x32xf32, #tpu.memory_space<vmem>>, %arg1: memref<32x64xf32, #tpu.memory_space<vmem>>, %arg2: memref<1x64xf32, #tpu.memory_space<vmem>>, %arg3: memref<64x32xf32, #tpu.memory_space<vmem>>, %arg4: memref<1x32xf32, #tpu.memory_space<vmem>>, %arg5: memref<32x16xf32, #tpu.memory_space<vmem>>, %arg6: memref<1x16xf32, #tpu.memory_space<vmem>>, %arg7: memref<8x16xf32, #tpu.memory_space<vmem>>) attributes {dimension_semantics = [], scalar_prefetch = 0 : i64, scratch_operands = 0 : i64, tpu.core_type = #tpu.core_type<tc>} {
    %c0 = arith.constant 0 : index
    %c0_0 = arith.constant 0 : index
    %0 = vector.load %arg0[%c0, %c0_0] : memref<8x32xf32, #tpu.memory_space<vmem>>, vector<8x32xf32>
    %c0_1 = arith.constant 0 : index
    %c0_2 = arith.constant 0 : index
    %1 = vector.load %arg1[%c0_1, %c0_2] : memref<32x64xf32, #tpu.memory_space<vmem>>, vector<32x64xf32>
    %c0_3 = arith.constant 0 : index
    %c0_4 = arith.constant 0 : index
    %2 = vector.load %arg2[%c0_3, %c0_4] : memref<1x64xf32, #tpu.memory_space<vmem>>, vector<1x64xf32>
    %cst = arith.constant dense<0.000000e+00> : vector<8x64xf32>
    %3 = tpu.matmul %0, %1, %cst {dimension_numbers = #tpu.dot_dimension_numbers<[1], [0], [0], [1], [0, 0, 1, 1], [], []>} : vector<8x32xf32>, vector<32x64xf32>, vector<8x64xf32> -> vector<8x64xf32>
    %4 = vector.broadcast %2 : vector<1x64xf32> to vector<8x64xf32>
    %5 = arith.addf %3, %4 : vector<8x64xf32>
    %6 = arith.negf %5 : vector<8x64xf32>
    %7 = math.exp %6 : vector<8x64xf32>
    %cst_5 = arith.constant 1.000000e+00 : f32
    %8 = vector.broadcast %cst_5 : f32 to vector<8x64xf32>
    %9 = arith.addf %8, %7 : vector<8x64xf32>
    %10 = arith.divf %8, %9 : vector<8x64xf32>
    %c0_6 = arith.constant 0 : index
    %c0_7 = arith.constant 0 : index
    %11 = vector.load %arg3[%c0_6, %c0_7] : memref<64x32xf32, #tpu.memory_space<vmem>>, vector<64x32xf32>
    %c0_8 = arith.constant 0 : index
    %c0_9 = arith.constant 0 : index
    %12 = vector.load %arg4[%c0_8, %c0_9] : memref<1x32xf32, #tpu.memory_space<vmem>>, vector<1x32xf32>
    %cst_10 = arith.constant dense<0.000000e+00> : vector<8x32xf32>
    %13 = tpu.matmul %10, %11, %cst_10 {dimension_numbers = #tpu.dot_dimension_numbers<[1], [0], [0], [1], [0, 0, 1, 1], [], []>} : vector<8x64xf32>, vector<64x32xf32>, vector<8x32xf32> -> vector<8x32xf32>
    %14 = vector.broadcast %12 : vector<1x32xf32> to vector<8x32xf32>
    %15 = arith.addf %13, %14 : vector<8x32xf32>
    %16 = arith.negf %15 : vector<8x32xf32>
    %17 = math.exp %16 : vector<8x32xf32>
    %cst_11 = arith.constant 1.000000e+00 : f32
    %18 = vector.broadcast %cst_11 : f32 to vector<8x32xf32>
    %19 = arith.addf %18, %17 : vector<8x32xf32>
    %20 = arith.divf %18, %19 : vector<8x32xf32>
    %c0_12 = arith.constant 0 : index
    %c0_13 = arith.constant 0 : index
    %21 = vector.load %arg5[%c0_12, %c0_13] : memref<32x16xf32, #tpu.memory_space<vmem>>, vector<32x16xf32>
    %c0_14 = arith.constant 0 : index
    %c0_15 = arith.constant 0 : index
    %22 = vector.load %arg6[%c0_14, %c0_15] : memref<1x16xf32, #tpu.memory_space<vmem>>, vector<1x16xf32>
    %cst_16 = arith.constant dense<0.000000e+00> : vector<8x16xf32>
    %23 = tpu.matmul %20, %21, %cst_16 {dimension_numbers = #tpu.dot_dimension_numbers<[1], [0], [0], [1], [0, 0, 1, 1], [], []>} : vector<8x32xf32>, vector<32x16xf32>, vector<8x16xf32> -> vector<8x16xf32>
    %24 = vector.broadcast %22 : vector<1x16xf32> to vector<8x16xf32>
    %25 = arith.addf %23, %24 : vector<8x16xf32>
    %c0_17 = arith.constant 0 : index
    %c0_18 = arith.constant 0 : index
    %26 = vector.load %arg7[%c0_17, %c0_18] : memref<8x16xf32, #tpu.memory_space<vmem>>, vector<8x16xf32>
    tpu.vector_store %arg7[%c0_17, %c0_18], %25 {strides = array<i32>} : memref<8x16xf32, #tpu.memory_space<vmem>>, vector<8x16xf32>,
    return
  }
}

</mosaic_0001>

<bundles_post_ra>
// kernel: tpu_custom_call.1
= control target key start
LH: loop header
LB: loop body
LE: loop exit
PB: predicated region body
PF: predicated region fallthrough
CT: control target
= control target key end

     0   :  { %v415_v1 = vmov 0.0   ;;  %vm416_vm0 = vmmov 0   ;;  %s545_s0 = inlined_call_operand.vmem [shape: f32[8,32], index: 0, kind: input, shape index: {}]   ;;  %s546_s1 = inlined_call_operand.vmem [shape: f32[32,64], index: 1, kind: input, shape index: {}]   ;;  %s547_s2 = inlined_call_operand.vmem [shape: f32[1,64], index: 2, kind: input, shape index: {}]   ;;  %s548_s3 = inlined_call_operand.vmem [shape: f32[64,32], index: 3, kind: input, shape index: {}]   ;;  %s549_s4 = inlined_call_operand.vmem [shape: f32[1,32], index: 4, kind: input, shape index: {}]   ;;  %s550_s5 = inlined_call_operand.vmem [shape: f32[32,16], index: 5, kind: input, shape index: {}]   ;;  %s551_s6 = inlined_call_operand.vmem [shape: f32[1,16], index: 6, kind: input, shape index: {}]   ;;  %s552_s7 = inlined_call_operand.hbm [shape: f32[8,16], index: 7, kind: output, shape index: {}]  }
   0x1   :  { %v31_v0 = vld [vmem:[%s546_s1 + $0x18] sm:$0xff]  ;;  %341 = vmatprep.subr.mxu0 %v415_v1  ;;  %v30_v2 = vld [vmem:[%s546_s1 + $0x10] sm:$0xff]  ;;  %349 = vmatprep.mubr.msk.f32.mxu0 %vm416_vm0, %v415_v1 }
   0x2   :  { %342 = vmatpush3.msra.mxu0 %v31_v0  ;;  %352 = vmatprep.subr.mxu1 %v415_v1 }
   0x3   :  { %12 = vsyncpa [#allocation3], 0  ;;  %343 = vmatprep.subr.mxu0 %v415_v1  ;;  %v29_v3 = vld [vmem:[%s546_s1 + $0x8] sm:$0xff]  ;;  %368 = vmatprep.mubr.msk.f32.mxu1 %vm416_vm0, %v415_v1  ;;  %v28_v4 = vld [vmem:[%s546_s1] sm:$0xff]  ;;  %vm39_vm1 = vcmask 261120   ;;  %vm134_vm2 = vcmask 523264  }
   0x4   :  { %344 = vmatpush3.msra.mxu0 %v30_v2  ;;  %v27_v5 = vld [vmem:[%s545_s0] sm:$0xff]  ;;  %v126_v6 = vld [vmem:[%s548_s3 + $0x38] sm:$0xff]  ;;  %v125_v7 = vld [vmem:[%s548_s3 + $0x30] sm:$0xff]  ;;  %s417_s1 = smov [#allocation2]   ;;  %vm298_vm3 = vcmask 130048  }
   0x5   :  { %345 = vmatprep.subr.mxu0 %v415_v1  ;;  %353 = vmatpush3.msra.mxu1 %v126_v6  ;;  %v124_v8 = vld [vmem:[%s548_s3 + $0x28] sm:$0xff]  ;;  %v123_v9 = vld [vmem:[%s548_s3 + $0x20] sm:$0xff]  ;;  %v122_v10 = vld [vmem:[%s548_s3 + $0x18] sm:$0xff]  ;;  %s306_s0 = sshll.u32 %s417_s1, 4  ;;  %s307_s0 = int_to_ptr.vmem [resolvable:$true] %s306_s0 }
   0x6   :  { %346 = vmatpush3.msra.mxu0 %v29_v3  ;;  %354 = vmatprep.subr.mxu1 %v415_v1  ;;  %v121_v11 = vld [vmem:[%s548_s3 + $0x10] sm:$0xff]  ;;  %v120_v12 = vld [vmem:[%s548_s3 + $0x8] sm:$0xff]  ;;  %v119_v13 = vld [vmem:[%s548_s3] sm:$0xff]  ;;  %p398_p1 = scmp.lt.s32.totalorder %s307_s0, %s307_s0 }
   0x7   :  { %347 = vmatprep.subr.mxu0 %v415_v1  ;;  %355 = vmatpush3.msra.mxu1 %v125_v7  ;;  %v314_v14 = vld [vmem:[%s547_s2] ss:$0 sm:$0xff]  ;;  %v217_v22 = vld [vmem:[%s550_s5 + $0x18] sm:$0xff]  ;;  %v216_v23 = vld [vmem:[%s550_s5 + $0x10] sm:$0xff] }
   0x8   :  { %348 = vmatpush3.msra.mxu0 %v28_v4  ;;  %356 = vmatprep.subr.mxu1 %v415_v1  ;;  %v215_v24 = vld [vmem:[%s550_s5 + $0x8] sm:$0xff]  ;;  %v214_v25 = vld [vmem:[%s550_s5] sm:$0xff] }
   0x9   :  { %350 = vmatmul.mubr.msk.f32.vlgmr.msra.gmra.mxu0 %vm39_vm1, %v27_v5  ;;  %371 = vmatprep.subr.mxu0 %v415_v1  ;;  %v317_v26 = vld [vmem:[%s549_s4] ss:$0 sm:$0xff]  ;;  %s393_s4 = scalar_lea.vmem %s307_s0, 128 }
   0xa   :  { %379 = vmatprep.mubr.msk.f32.mxu0 %vm416_vm0, %v415_v1  ;;  %357 = vmatpush3.msra.mxu1 %v124_v8  ;;  %v320_v34 = vld [vmem:[%s551_s6] ss:$0 sm:$0xff]  ;;  %p394_p0 = scmp.ne.s32.totalorder %s307_s0, %s393_s4  ;;  %p399_p2 = scmp.lt.s32.totalorder %s393_s4, %s393_s4 }
   0xb   :  { %358 = vmatprep.subr.mxu1 %v415_v1  ;;  %372 = vmatpush3.msra.mxu0 %v217_v22 }
   0xc   :  { %359 = vmatpush3.msra.mxu1 %v123_v9  ;;  %373 = vmatprep.subr.mxu0 %v415_v1  ;;  %p400_p3 = por %p399_p2, %p398_p1 }
   0xd   :  { %360 = vmatprep.subr.mxu1 %v415_v1  ;;  %374 = vmatpush3.msra.mxu0 %v216_v23 }
   0xe   :  { %361 = vmatpush3.msra.mxu1 %v122_v10  ;;  %375 = vmatprep.subr.mxu0 %v415_v1  ;;  %p401_p4 = pnand %p400_p3, %p394_p0 }
   0xf   :  { %362 = vmatprep.subr.mxu1 %v415_v1  ;;  %376 = vmatpush3.msra.mxu0 %v215_v24 }
  0x10   :  { %363 = vmatpush3.msra.mxu1 %v121_v11  ;;  %377 = vmatprep.subr.mxu0 %v415_v1 }
  0x11   :  { %364 = vmatprep.subr.mxu1 %v415_v1  ;;  %378 = vmatpush3.msra.mxu0 %v214_v25 }
  0x12   :  { %365 = vmatpush3.msra.mxu1 %v120_v12 }
  0x13   :  { %366 = vmatprep.subr.mxu1 %v415_v1 }
  0x14   :  { %367 = vmatpush3.msra.mxu1 %v119_v13 }
  0xc9   :  { %v109_v15 = vpop.f32.mrf.mxu0 }
  0xca   :  { %v110_v16 = vadd.f32 %v314_v14, %v109_v15 }
  0xcb   :  { %v351_v17 = vpop.f32.mrf.mxu0 }
  0xcc   :  { %v316_v18 = vmul.f32 -1.442695, %v110_v16 }
  0xce   :  { %385 = vpow2.f32 %v316_v18 }
  0xdb   :  { %v386_v19 = vpop.eup %385 }
  0xdc   :  { %v116_v20 = vadd.f32 1.0, %v386_v19 }
  0xde   :  { %387 = vrcp.f32 %v116_v20 }
  0xeb   :  { %v388_v21 = vpop.eup %387 }
  0xec   :  { %369 = vmatmul.mubr.msk.f32.vlgmr.msra.gmra.mxu1 %vm134_vm2, %v388_v21 }
 0x1ac   :  { %v204_v27 = vpop.f32.mrf.mxu1 }
 0x1ad   :  { %v205_v28 = vadd.f32 %v317_v26, %v204_v27 }
 0x1ae   :  { %v370_v29 = vpop.f32.mrf.mxu1 }
 0x1af   :  { %v319_v30 = vmul.f32 -1.442695, %v205_v28 }
 0x1b1   :  { %389 = vpow2.f32 %v319_v30 }
 0x1be   :  { %v390_v31 = vpop.eup %389 }
 0x1bf   :  { %v211_v32 = vadd.f32 1.0, %v390_v31 }
 0x1c1   :  { %391 = vrcp.f32 %v211_v32 }
 0x1ce   :  { %v392_v33 = vpop.eup %391 }
 0x1cf   :  { %380 = vmatmul.mubr.msk.f32.vlgmr.msra.gmra.mxu0 %vm39_vm1, %v392_v33 }
 0x28f   :  { %v294_v35 = vpop.f32.mrf.mxu0 }
 0x290   :  { %v295_v36 = vadd.f32 %v320_v34, %v294_v35 }
 0x291   :  { %v381_v37 = vpop.f32.mrf.mxu0 }
 0x292   :  { %299 = vst.msk [vmem:[#allocation2] sm:$0xff] %vm298_vm3, %v295_v36 }
 0x293   :  { %404 = shalt.err (!%p401_p4)
}
 0x294   :  { %309 = dma.vmem_to_hbm [thread:$0]  %s307_s0, 128, %s552_s7, [#allocation3]  }
 0x295   :  { %413 = dma.done.wait [#allocation3], 128  }
 0x296   :  { %414 = vsyncadd [#allocation3], 4294967168 }
 0x297   :  { %313 = vsyncpa [#allocation3], 1 }

</bundles_post_ra>
